<compile_context>
chip_gen: v7x
topology: tpu7x:2x2x1
jax: 0.10.0
libtpu: 0.0.40
codegen_flags: <defaults>
</compile_context>

<pallas_src>
import functools

import jax
import jax.numpy as jnp
from jax.experimental import pallas as pl
from jax.experimental.pallas import tpu as pltpu

LANE = 128


def _round_up(n, m):
    return ((n + m - 1) // m) * m


def _pad_to(a, shape):
    pads = [(0, s - d) for d, s in zip(a.shape, shape)]
    return jnp.pad(a, pads)


def _use_bf16_elementwise():
    """bf16 VALU exists on v6e / v7x; keep f32 elementwise elsewhere (v5e, v4, ...)."""
    try:
        kind = jax.devices()[0].device_kind.lower()
    except Exception:
        return False
    return any(tag in kind for tag in ("v6", "v7", "7x"))


def _mlp_kernel(x_ref, w1_ref, b1_ref, w2_ref, b2_ref, w3_ref, b3_ref,
                w4_ref, b4_ref, o_ref, *, x_in, ew_dtype):
    # ---- Layer 1 on the VPU (contraction depth x_in=2 is too shallow for MXU) ----
    x = x_ref[...]                        # (tile_n, x_in)  f32
    w1 = w1_ref[...]                      # (x_in, Hp)      f32
    h = x[:, 0:1] * w1[0:1, :]            # (tile_n, Hp) via broadcast FMA
    for k in range(1, x_in):              # x_in is static & tiny
        h = h + x[:, k:k + 1] * w1[k:k + 1, :]
    h = jnp.maximum(h + b1_ref[...], 0.0)           # f32 bias + ReLU
    h = h.astype(jnp.bfloat16)                      # MXU LHS is bf16

    # ---- Layers 2-3 on the MXU: bf16 inputs, f32 accumulation, ew_dtype elementwise ----
    def mm_bias_relu(h_bf16, w_ref, b_ref):
        a = jnp.dot(h_bf16, w_ref[...], preferred_element_type=jnp.float32)
        a = a.astype(ew_dtype) + b_ref[...]          # bias add in ew_dtype
        a = jnp.maximum(a, 0.0)                      # ReLU in ew_dtype
        return a.astype(jnp.bfloat16)

    h = mm_bias_relu(h, w2_ref, b2_ref)
    h = mm_bias_relu(h, w3_ref, b3_ref)

    # ---- Layer 4: f32 accumulate + f32 bias, no ReLU ----
    out = jnp.dot(h, w4_ref[...], preferred_element_type=jnp.float32) + b4_ref[...]
    o_ref[...] = out.astype(o_ref.dtype)


def prepare_params(params, *, elementwise_bf16=None):
    """One-time padding / casting of the weights (hoisted out of the forward)."""
    if elementwise_bf16 is None:
        elementwise_bf16 = _use_bf16_elementwise()
    ew = jnp.bfloat16 if elementwise_bf16 else jnp.float32

    (w1, b1), (w2, b2), (w3, b3), (w4, b4) = params
    x_in, H = w1.shape
    x_out = w4.shape[1]
    Hp = _round_up(H, LANE)
    Op = _round_up(x_out, LANE)

    prepped = {
        "x_in": x_in, "x_out": x_out, "Hp": Hp, "Op": Op,
        "ew_bf16": bool(elementwise_bf16),
        # Layer 1 stays f32 (VPU path); MXU weights go bf16; b2/b3 in ew dtype.
        "w1": _pad_to(w1.astype(jnp.float32), (x_in, Hp)),
        "b1": _pad_to(jnp.reshape(b1, (1, -1)).astype(jnp.float32), (1, Hp)),
        "w2": _pad_to(w2, (Hp, Hp)).astype(jnp.bfloat16),
        "b2": _pad_to(jnp.reshape(b2, (1, -1)), (1, Hp)).astype(ew),
        "w3": _pad_to(w3, (Hp, Hp)).astype(jnp.bfloat16),
        "b3": _pad_to(jnp.reshape(b3, (1, -1)), (1, Hp)).astype(ew),
        "w4": _pad_to(w4, (Hp, Op)).astype(jnp.bfloat16),
        "b4": _pad_to(jnp.reshape(b4, (1, -1)), (1, Op)).astype(jnp.float32),
    }
    return prepped


def _choose_tile_n(N, max_tile_n, min_grid_steps):
    """16-row aligned batch tile; >=2 grid steps for larger N (v7x megacore)."""
    max_tile_n = max(_round_up(max_tile_n, 16), 16)
    n16 = _round_up(max(N, 1), 16)
    if n16 <= 128:
        return n16                      # tiny batch: single fat step, least overhead
    tile = _round_up(pl.cdiv(n16, max(min_grid_steps, 1)), 16)
    return min(tile, max_tile_n)


def model_latent_f(x, prepped, *, max_tile_n=1024, min_grid_steps=2,
                   return_padded=False):
    """Forward pass. x: (N, x_in) -> (N, x_out) f32 (or (Np, 128) if return_padded)."""
    N, x_in = x.shape
    assert x_in == prepped["x_in"], "x feature dim mismatch with prepared params"
    Hp, Op, x_out = prepped["Hp"], prepped["Op"], prepped["x_out"]
    ew_dtype = jnp.bfloat16 if prepped["ew_bf16"] else jnp.float32

    tile_n = _choose_tile_n(N, max_tile_n, min_grid_steps)
    Np = _round_up(N, tile_n)
    x_p = x.astype(jnp.float32)
    if Np != N:
        x_p = jnp.pad(x_p, ((0, Np - N), (0, 0)))

    flops = 2 * Np * (x_in * Hp + 2 * Hp * Hp + Hp * Op)
    param_bytes = sum(int(prepped[k].size) * prepped[k].dtype.itemsize
                      for k in ("w1", "b1", "w2", "b2", "w3", "b3", "w4", "b4"))
    bytes_accessed = int(x_p.size) * 4 + Np * Op * 4 + param_bytes

    def _run(single_buffer_consts):
        if single_buffer_consts:
            def const_spec(shape):
                return pl.BlockSpec(shape, lambda i: (0,) * len(shape),
                                    pipeline_mode=pl.Buffered(1))
        else:
            def const_spec(shape):
                return pl.BlockSpec(shape, lambda i: (0,) * len(shape))

        return pl.pallas_call(
            functools.partial(_mlp_kernel, x_in=x_in, ew_dtype=ew_dtype),
            out_shape=jax.ShapeDtypeStruct((Np, Op), jnp.float32),
            grid_spec=pltpu.PrefetchScalarGridSpec(
                num_scalar_prefetch=0,
                grid=(Np // tile_n,),
                in_specs=[
                    pl.BlockSpec((tile_n, x_in), lambda i: (i, 0)),   # x tile
                    const_spec(prepped["w1"].shape), const_spec(prepped["b1"].shape),
                    const_spec(prepped["w2"].shape), const_spec(prepped["b2"].shape),
                    const_spec(prepped["w3"].shape), const_spec(prepped["b3"].shape),
                    const_spec(prepped["w4"].shape), const_spec(prepped["b4"].shape),
                ],
                out_specs=pl.BlockSpec((tile_n, Op), lambda i: (i, 0)),
            ),
            compiler_params=pltpu.CompilerParams(
                dimension_semantics=("parallel",)),
            cost_estimate=pl.CostEstimate(
                flops=flops, transcendentals=0, bytes_accessed=bytes_accessed),
        )(x_p, prepped["w1"], prepped["b1"], prepped["w2"], prepped["b2"],
          prepped["w3"], prepped["b3"], prepped["w4"], prepped["b4"])

    try:
        out_p = _run(True)
    except Exception:
        # Fallback if this jax build does not accept pipeline_mode=pl.Buffered(1)
        # on a BlockSpec (hygiene-level optimization only).
        out_p = _run(False)

    if return_padded:
        # Large-N consumers can take the lane-dense padded slab directly and
        # avoid the extra HBM read/write pass of the slice below.
        return out_p
    return out_p[:N, :x_out]


def init_params(key, x_in, H, x_out):
    """Deterministic init mimicking torch.nn.Linear default (uniform +/- 1/sqrt(fan_in))."""
    dims = [(x_in, H), (H, H), (H, H), (H, x_out)]
    params = []
    for d_in, d_out in dims:
        key, kw, kb = jax.random.split(key, 3)
        bound = 1.0 / jnp.sqrt(d_in)
        w = jax.random.uniform(kw, (d_in, d_out), jnp.float32, -bound, bound)
        b = jax.random.uniform(kb, (1, d_out), jnp.float32, -bound, bound)
        params.append((w, b))
    return params


def reference_forward(x, params):
    h = x
    for i, (w, b) in enumerate(params):
        h = jnp.dot(h, w, precision=jax.lax.Precision.HIGHEST) + b
        if i < len(params) - 1:
            h = jnp.maximum(h, 0.0)
    return h


if __name__ == "__main__":
    # Module defaults: "Dense Net with w=50, d=4, in=2, out=50"
    x_in, H, x_out = 2, 50, 50
    N = 64  # small batch -> single grid step

    key = jax.random.PRNGKey(0)
    key, kx = jax.random.split(key)
    x = jax.random.normal(kx, (N, x_in), jnp.float32)
    params = init_params(key, x_in, H, x_out)

    # One-time weight padding / casting (hoisted out of the forward pass).
    prepped = prepare_params(params)

    out = jax.block_until_ready(model_latent_f(x, prepped))
    ref = reference_forward(x, params)

    assert out.shape == (N, x_out)
    # bf16 MXU inputs (+ bf16 elementwise on v6e/v7x) with f32 accumulation ->
    # loosened tolerance vs the full-f32 reference.
    err = float(jnp.max(jnp.abs(out - ref)))
    assert jnp.allclose(out, ref, atol=5e-2, rtol=5e-2), f"max abs err = {err}"
    print("KERNEL_OK")
</pallas_src>

<mosaic_0001>
module attributes {stable_mosaic.version = 11 : i64} {
  func.func @_mlp_kernel(%arg0: i32, %arg1: memref<64x2xf32, #tpu.memory_space<vmem>>, %arg2: memref<2x128xf32, #tpu.memory_space<vmem>>, %arg3: memref<1x128xf32, #tpu.memory_space<vmem>>, %arg4: memref<128x128xbf16, #tpu.memory_space<vmem>>, %arg5: memref<1x128xf32, #tpu.memory_space<vmem>>, %arg6: memref<128x128xbf16, #tpu.memory_space<vmem>>, %arg7: memref<1x128xf32, #tpu.memory_space<vmem>>, %arg8: memref<128x128xbf16, #tpu.memory_space<vmem>>, %arg9: memref<1x128xf32, #tpu.memory_space<vmem>>, %arg10: memref<64x128xf32, #tpu.memory_space<vmem>>) attributes {dimension_semantics = [#tpu.dimension_semantics<parallel>], iteration_bounds = array<i64: 1>, scalar_prefetch = 0 : i64, scratch_operands = 0 : i64, tpu.core_type = #tpu.core_type<tc>, window_params = [{transform_indices = @transform_0, window_bounds = array<i64: 64, 2>}, {pipeline_mode = #tpu.pipeline_mode<synchronous>, transform_indices = @transform_1, window_bounds = array<i64: 2, 128>}, {pipeline_mode = #tpu.pipeline_mode<synchronous>, transform_indices = @transform_2, window_bounds = array<i64: 1, 128>}, {pipeline_mode = #tpu.pipeline_mode<synchronous>, transform_indices = @transform_3, window_bounds = array<i64: 128, 128>}, {pipeline_mode = #tpu.pipeline_mode<synchronous>, transform_indices = @transform_4, window_bounds = array<i64: 1, 128>}, {pipeline_mode = #tpu.pipeline_mode<synchronous>, transform_indices = @transform_5, window_bounds = array<i64: 128, 128>}, {pipeline_mode = #tpu.pipeline_mode<synchronous>, transform_indices = @transform_6, window_bounds = array<i64: 1, 128>}, {pipeline_mode = #tpu.pipeline_mode<synchronous>, transform_indices = @transform_7, window_bounds = array<i64: 128, 128>}, {pipeline_mode = #tpu.pipeline_mode<synchronous>, transform_indices = @transform_8, window_bounds = array<i64: 1, 128>}, {transform_indices = @transform_9, window_bounds = array<i64: 64, 128>}]} {
    %c0 = arith.constant 0 : index
    %c0_0 = arith.constant 0 : index
    %0 = vector.load %arg1[%c0, %c0_0] : memref<64x2xf32, #tpu.memory_space<vmem>>, vector<64x2xf32>
    %c0_1 = arith.constant 0 : index
    %c0_2 = arith.constant 0 : index
    %1 = vector.load %arg2[%c0_1, %c0_2] : memref<2x128xf32, #tpu.memory_space<vmem>>, vector<2x128xf32>
    %2 = vector.extract_strided_slice %0 {offsets = [0, 0], sizes = [64, 1], strides = [1, 1]} : vector<64x2xf32> to vector<64x1xf32>
    %3 = vector.extract_strided_slice %1 {offsets = [0, 0], sizes = [1, 128], strides = [1, 1]} : vector<2x128xf32> to vector<1x128xf32>
    %4 = vector.broadcast %2 : vector<64x1xf32> to vector<64x128xf32>
    %5 = vector.broadcast %3 : vector<1x128xf32> to vector<64x128xf32>
    %6 = arith.mulf %4, %5 : vector<64x128xf32>
    %7 = vector.extract_strided_slice %0 {offsets = [0, 1], sizes = [64, 1], strides = [1, 1]} : vector<64x2xf32> to vector<64x1xf32>
    %8 = vector.extract_strided_slice %1 {offsets = [1, 0], sizes = [1, 128], strides = [1, 1]} : vector<2x128xf32> to vector<1x128xf32>
    %9 = vector.broadcast %7 : vector<64x1xf32> to vector<64x128xf32>
    %10 = vector.broadcast %8 : vector<1x128xf32> to vector<64x128xf32>
    %11 = arith.mulf %9, %10 : vector<64x128xf32>
    %12 = arith.addf %6, %11 : vector<64x128xf32>
    %c0_3 = arith.constant 0 : index
    %c0_4 = arith.constant 0 : index
    %13 = vector.load %arg3[%c0_3, %c0_4] : memref<1x128xf32, #tpu.memory_space<vmem>>, vector<1x128xf32>
    %14 = vector.broadcast %13 : vector<1x128xf32> to vector<64x128xf32>
    %15 = arith.addf %12, %14 : vector<64x128xf32>
    %cst = arith.constant 0.000000e+00 : f32
    %16 = vector.broadcast %cst : f32 to vector<64x128xf32>
    %17 = arith.maximumf %15, %16 : vector<64x128xf32>
    %18 = arith.truncf %17 : vector<64x128xf32> to vector<64x128xbf16>
    %c0_5 = arith.constant 0 : index
    %c0_6 = arith.constant 0 : index
    %19 = vector.load %arg4[%c0_5, %c0_6] : memref<128x128xbf16, #tpu.memory_space<vmem>>, vector<128x128xbf16>
    %cst_7 = arith.constant dense<0.000000e+00> : vector<64x128xf32>
    %20 = tpu.matmul %18, %19, %cst_7 {dimension_numbers = #tpu.dot_dimension_numbers<[1], [0], [0], [1], [0, 0, 1, 1], [], []>} : vector<64x128xbf16>, vector<128x128xbf16>, vector<64x128xf32> -> vector<64x128xf32>
    %c0_8 = arith.constant 0 : index
    %c0_9 = arith.constant 0 : index
    %21 = vector.load %arg5[%c0_8, %c0_9] : memref<1x128xf32, #tpu.memory_space<vmem>>, vector<1x128xf32>
    %22 = vector.broadcast %21 : vector<1x128xf32> to vector<64x128xf32>
    %23 = arith.addf %20, %22 : vector<64x128xf32>
    %cst_10 = arith.constant 0.000000e+00 : f32
    %24 = vector.broadcast %cst_10 : f32 to vector<64x128xf32>
    %25 = arith.maximumf %23, %24 : vector<64x128xf32>
    %26 = arith.truncf %25 : vector<64x128xf32> to vector<64x128xbf16>
    %c0_11 = arith.constant 0 : index
    %c0_12 = arith.constant 0 : index
    %27 = vector.load %arg6[%c0_11, %c0_12] : memref<128x128xbf16, #tpu.memory_space<vmem>>, vector<128x128xbf16>
    %cst_13 = arith.constant dense<0.000000e+00> : vector<64x128xf32>
    %28 = tpu.matmul %26, %27, %cst_13 {dimension_numbers = #tpu.dot_dimension_numbers<[1], [0], [0], [1], [0, 0, 1, 1], [], []>} : vector<64x128xbf16>, vector<128x128xbf16>, vector<64x128xf32> -> vector<64x128xf32>
    %c0_14 = arith.constant 0 : index
    %c0_15 = arith.constant 0 : index
    %29 = vector.load %arg7[%c0_14, %c0_15] : memref<1x128xf32, #tpu.memory_space<vmem>>, vector<1x128xf32>
    %30 = vector.broadcast %29 : vector<1x128xf32> to vector<64x128xf32>
    %31 = arith.addf %28, %30 : vector<64x128xf32>
    %cst_16 = arith.constant 0.000000e+00 : f32
    %32 = vector.broadcast %cst_16 : f32 to vector<64x128xf32>
    %33 = arith.maximumf %31, %32 : vector<64x128xf32>
    %34 = arith.truncf %33 : vector<64x128xf32> to vector<64x128xbf16>
    %c0_17 = arith.constant 0 : index
    %c0_18 = arith.constant 0 : index
    %35 = vector.load %arg8[%c0_17, %c0_18] : memref<128x128xbf16, #tpu.memory_space<vmem>>, vector<128x128xbf16>
    %cst_19 = arith.constant dense<0.000000e+00> : vector<64x128xf32>
    %36 = tpu.matmul %34, %35, %cst_19 {dimension_numbers = #tpu.dot_dimension_numbers<[1], [0], [0], [1], [0, 0, 1, 1], [], []>} : vector<64x128xbf16>, vector<128x128xbf16>, vector<64x128xf32> -> vector<64x128xf32>
    %c0_20 = arith.constant 0 : index
    %c0_21 = arith.constant 0 : index
    %37 = vector.load %arg9[%c0_20, %c0_21] : memref<1x128xf32, #tpu.memory_space<vmem>>, vector<1x128xf32>
    %38 = vector.broadcast %37 : vector<1x128xf32> to vector<64x128xf32>
    %39 = arith.addf %36, %38 : vector<64x128xf32>
    %c0_22 = arith.constant 0 : index
    %c0_23 = arith.constant 0 : index
    %40 = vector.load %arg10[%c0_22, %c0_23] : memref<64x128xf32, #tpu.memory_space<vmem>>, vector<64x128xf32>
    tpu.vector_store %arg10[%c0_22, %c0_23], %39 {strides = array<i32>} : memref<64x128xf32, #tpu.memory_space<vmem>>, vector<64x128xf32>,
    return
  }
  func.func @transform_0(%arg0: i32) -> (i32, i32) {
    %c0_i32 = arith.constant 0 : i32
    %c0_i32_0 = arith.constant 0 : i32
    return %arg0, %c0_i32 : i32, i32
  }
  func.func @transform_1(%arg0: i32) -> (i32, i32) {
    %c0_i32 = arith.constant 0 : i32
    %c0_i32_0 = arith.constant 0 : i32
    %c0_i32_1 = arith.constant 0 : i32
    return %c0_i32, %c0_i32_0 : i32, i32
  }
  func.func @transform_2(%arg0: i32) -> (i32, i32) {
    %c0_i32 = arith.constant 0 : i32
    %c0_i32_0 = arith.constant 0 : i32
    %c0_i32_1 = arith.constant 0 : i32
    return %c0_i32, %c0_i32_0 : i32, i32
  }
  func.func @transform_3(%arg0: i32) -> (i32, i32) {
    %c0_i32 = arith.constant 0 : i32
    %c0_i32_0 = arith.constant 0 : i32
    %c0_i32_1 = arith.constant 0 : i32
    return %c0_i32, %c0_i32_0 : i32, i32
  }
  func.func @transform_4(%arg0: i32) -> (i32, i32) {
    %c0_i32 = arith.constant 0 : i32
    %c0_i32_0 = arith.constant 0 : i32
    %c0_i32_1 = arith.constant 0 : i32
    return %c0_i32, %c0_i32_0 : i32, i32
  }
  func.func @transform_5(%arg0: i32) -> (i32, i32) {
    %c0_i32 = arith.constant 0 : i32
    %c0_i32_0 = arith.constant 0 : i32
    %c0_i32_1 = arith.constant 0 : i32
    return %c0_i32, %c0_i32_0 : i32, i32
  }
  func.func @transform_6(%arg0: i32) -> (i32, i32) {
    %c0_i32 = arith.constant 0 : i32
    %c0_i32_0 = arith.constant 0 : i32
    %c0_i32_1 = arith.constant 0 : i32
    return %c0_i32, %c0_i32_0 : i32, i32
  }
  func.func @transform_7(%arg0: i32) -> (i32, i32) {
    %c0_i32 = arith.constant 0 : i32
    %c0_i32_0 = arith.constant 0 : i32
    %c0_i32_1 = arith.constant 0 : i32
    return %c0_i32, %c0_i32_0 : i32, i32
  }
  func.func @transform_8(%arg0: i32) -> (i32, i32) {
    %c0_i32 = arith.constant 0 : i32
    %c0_i32_0 = arith.constant 0 : i32
    %c0_i32_1 = arith.constant 0 : i32
    return %c0_i32, %c0_i32_0 : i32, i32
  }
  func.func @transform_9(%arg0: i32) -> (i32, i32) {
    %c0_i32 = arith.constant 0 : i32
    %c0_i32_0 = arith.constant 0 : i32
    return %arg0, %c0_i32 : i32, i32
  }
}

module attributes {stable_mosaic.version = 11 : i64} {
  func.func @_mlp_kernel(%arg0: i32, %arg1: memref<64x2xf32, #tpu.memory_space<vmem>>, %arg2: memref<2x128xf32, #tpu.memory_space<vmem>>, %arg3: memref<1x128xf32, #tpu.memory_space<vmem>>, %arg4: memref<128x128xbf16, #tpu.memory_space<vmem>>, %arg5: memref<1x128xf32, #tpu.memory_space<vmem>>, %arg6: memref<128x128xbf16, #tpu.memory_space<vmem>>, %arg7: memref<1x128xf32, #tpu.memory_space<vmem>>, %arg8: memref<128x128xbf16, #tpu.memory_space<vmem>>, %arg9: memref<1x128xf32, #tpu.memory_space<vmem>>, %arg10: memref<64x128xf32, #tpu.memory_space<vmem>>) attributes {dimension_semantics = [#tpu.dimension_semantics<parallel>], iteration_bounds = array<i64: 1>, scalar_prefetch = 0 : i64, scratch_operands = 0 : i64, tpu.core_type = #tpu.core_type<tc>, window_params = [{transform_indices = @transform_0, window_bounds = array<i64: 64, 2>}, {pipeline_mode = #tpu.pipeline_mode<synchronous>, transform_indices = @transform_1, window_bounds = array<i64: 2, 128>}, {pipeline_mode = #tpu.pipeline_mode<synchronous>, transform_indices = @transform_2, window_bounds = array<i64: 1, 128>}, {pipeline_mode = #tpu.pipeline_mode<synchronous>, transform_indices = @transform_3, window_bounds = array<i64: 128, 128>}, {pipeline_mode = #tpu.pipeline_mode<synchronous>, transform_indices = @transform_4, window_bounds = array<i64: 1, 128>}, {pipeline_mode = #tpu.pipeline_mode<synchronous>, transform_indices = @transform_5, window_bounds = array<i64: 128, 128>}, {pipeline_mode = #tpu.pipeline_mode<synchronous>, transform_indices = @transform_6, window_bounds = array<i64: 1, 128>}, {pipeline_mode = #tpu.pipeline_mode<synchronous>, transform_indices = @transform_7, window_bounds = array<i64: 128, 128>}, {pipeline_mode = #tpu.pipeline_mode<synchronous>, transform_indices = @transform_8, window_bounds = array<i64: 1, 128>}, {transform_indices = @transform_9, window_bounds = array<i64: 64, 128>}]} {
    %c0 = arith.constant 0 : index
    %c0_0 = arith.constant 0 : index
    %0 = vector.load %arg1[%c0, %c0_0] : memref<64x2xf32, #tpu.memory_space<vmem>>, vector<64x2xf32>
    %c0_1 = arith.constant 0 : index
    %c0_2 = arith.constant 0 : index
    %1 = vector.load %arg2[%c0_1, %c0_2] : memref<2x128xf32, #tpu.memory_space<vmem>>, vector<2x128xf32>
    %2 = vector.extract_strided_slice %0 {offsets = [0, 0], sizes = [64, 1], strides = [1, 1]} : vector<64x2xf32> to vector<64x1xf32>
    %3 = vector.extract_strided_slice %1 {offsets = [0, 0], sizes = [1, 128], strides = [1, 1]} : vector<2x128xf32> to vector<1x128xf32>
    %4 = vector.broadcast %2 : vector<64x1xf32> to vector<64x128xf32>
    %5 = vector.broadcast %3 : vector<1x128xf32> to vector<64x128xf32>
    %6 = arith.mulf %4, %5 : vector<64x128xf32>
    %7 = vector.extract_strided_slice %0 {offsets = [0, 1], sizes = [64, 1], strides = [1, 1]} : vector<64x2xf32> to vector<64x1xf32>
    %8 = vector.extract_strided_slice %1 {offsets = [1, 0], sizes = [1, 128], strides = [1, 1]} : vector<2x128xf32> to vector<1x128xf32>
    %9 = vector.broadcast %7 : vector<64x1xf32> to vector<64x128xf32>
    %10 = vector.broadcast %8 : vector<1x128xf32> to vector<64x128xf32>
    %11 = arith.mulf %9, %10 : vector<64x128xf32>
    %12 = arith.addf %6, %11 : vector<64x128xf32>
    %c0_3 = arith.constant 0 : index
    %c0_4 = arith.constant 0 : index
    %13 = vector.load %arg3[%c0_3, %c0_4] : memref<1x128xf32, #tpu.memory_space<vmem>>, vector<1x128xf32>
    %14 = vector.broadcast %13 : vector<1x128xf32> to vector<64x128xf32>
    %15 = arith.addf %12, %14 : vector<64x128xf32>
    %cst = arith.constant 0.000000e+00 : f32
    %16 = vector.broadcast %cst : f32 to vector<64x128xf32>
    %17 = arith.maximumf %15, %16 : vector<64x128xf32>
    %18 = arith.truncf %17 : vector<64x128xf32> to vector<64x128xbf16>
    %c0_5 = arith.constant 0 : index
    %c0_6 = arith.constant 0 : index
    %19 = vector.load %arg4[%c0_5, %c0_6] : memref<128x128xbf16, #tpu.memory_space<vmem>>, vector<128x128xbf16>
    %cst_7 = arith.constant dense<0.000000e+00> : vector<64x128xf32>
    %20 = tpu.matmul %18, %19, %cst_7 {dimension_numbers = #tpu.dot_dimension_numbers<[1], [0], [0], [1], [0, 0, 1, 1], [], []>} : vector<64x128xbf16>, vector<128x128xbf16>, vector<64x128xf32> -> vector<64x128xf32>
    %c0_8 = arith.constant 0 : index
    %c0_9 = arith.constant 0 : index
    %21 = vector.load %arg5[%c0_8, %c0_9] : memref<1x128xf32, #tpu.memory_space<vmem>>, vector<1x128xf32>
    %22 = vector.broadcast %21 : vector<1x128xf32> to vector<64x128xf32>
    %23 = arith.addf %20, %22 : vector<64x128xf32>
    %cst_10 = arith.constant 0.000000e+00 : f32
    %24 = vector.broadcast %cst_10 : f32 to vector<64x128xf32>
    %25 = arith.maximumf %23, %24 : vector<64x128xf32>
    %26 = arith.truncf %25 : vector<64x128xf32> to vector<64x128xbf16>
    %c0_11 = arith.constant 0 : index
    %c0_12 = arith.constant 0 : index
    %27 = vector.load %arg6[%c0_11, %c0_12] : memref<128x128xbf16, #tpu.memory_space<vmem>>, vector<128x128xbf16>
    %cst_13 = arith.constant dense<0.000000e+00> : vector<64x128xf32>
    %28 = tpu.matmul %26, %27, %cst_13 {dimension_numbers = #tpu.dot_dimension_numbers<[1], [0], [0], [1], [0, 0, 1, 1], [], []>} : vector<64x128xbf16>, vector<128x128xbf16>, vector<64x128xf32> -> vector<64x128xf32>
    %c0_14 = arith.constant 0 : index
    %c0_15 = arith.constant 0 : index
    %29 = vector.load %arg7[%c0_14, %c0_15] : memref<1x128xf32, #tpu.memory_space<vmem>>, vector<1x128xf32>
    %30 = vector.broadcast %29 : vector<1x128xf32> to vector<64x128xf32>
    %31 = arith.addf %28, %30 : vector<64x128xf32>
    %cst_16 = arith.constant 0.000000e+00 : f32
    %32 = vector.broadcast %cst_16 : f32 to vector<64x128xf32>
    %33 = arith.maximumf %31, %32 : vector<64x128xf32>
    %34 = arith.truncf %33 : vector<64x128xf32> to vector<64x128xbf16>
    %c0_17 = arith.constant 0 : index
    %c0_18 = arith.constant 0 : index
    %35 = vector.load %arg8[%c0_17, %c0_18] : memref<128x128xbf16, #tpu.memory_space<vmem>>, vector<128x128xbf16>
    %cst_19 = arith.constant dense<0.000000e+00> : vector<64x128xf32>
    %36 = tpu.matmul %34, %35, %cst_19 {dimension_numbers = #tpu.dot_dimension_numbers<[1], [0], [0], [1], [0, 0, 1, 1], [], []>} : vector<64x128xbf16>, vector<128x128xbf16>, vector<64x128xf32> -> vector<64x128xf32>
    %c0_20 = arith.constant 0 : index
    %c0_21 = arith.constant 0 : index
    %37 = vector.load %arg9[%c0_20, %c0_21] : memref<1x128xf32, #tpu.memory_space<vmem>>, vector<1x128xf32>
    %38 = vector.broadcast %37 : vector<1x128xf32> to vector<64x128xf32>
    %39 = arith.addf %36, %38 : vector<64x128xf32>
    %c0_22 = arith.constant 0 : index
    %c0_23 = arith.constant 0 : index
    %40 = vector.load %arg10[%c0_22, %c0_23] : memref<64x128xf32, #tpu.memory_space<vmem>>, vector<64x128xf32>
    tpu.vector_store %arg10[%c0_22, %c0_23], %39 {strides = array<i32>} : memref<64x128xf32, #tpu.memory_space<vmem>>, vector<64x128xf32>,
    return
  }
  func.func @transform_0(%arg0: i32) -> (i32, i32) {
    %c0_i32 = arith.constant 0 : i32
    %c0_i32_0 = arith.constant 0 : i32
    return %arg0, %c0_i32 : i32, i32
  }
  func.func @transform_1(%arg0: i32) -> (i32, i32) {
    %c0_i32 = arith.constant 0 : i32
    %c0_i32_0 = arith.constant 0 : i32
    %c0_i32_1 = arith.constant 0 : i32
    return %c0_i32, %c0_i32_0 : i32, i32
  }
  func.func @transform_2(%arg0: i32) -> (i32, i32) {
    %c0_i32 = arith.constant 0 : i32
    %c0_i32_0 = arith.constant 0 : i32
    %c0_i32_1 = arith.constant 0 : i32
    return %c0_i32, %c0_i32_0 : i32, i32
  }
  func.func @transform_3(%arg0: i32) -> (i32, i32) {
    %c0_i32 = arith.constant 0 : i32
    %c0_i32_0 = arith.constant 0 : i32
    %c0_i32_1 = arith.constant 0 : i32
    return %c0_i32, %c0_i32_0 : i32, i32
  }
  func.func @transform_4(%arg0: i32) -> (i32, i32) {
    %c0_i32 = arith.constant 0 : i32
    %c0_i32_0 = arith.constant 0 : i32
    %c0_i32_1 = arith.constant 0 : i32
    return %c0_i32, %c0_i32_0 : i32, i32
  }
  func.func @transform_5(%arg0: i32) -> (i32, i32) {
    %c0_i32 = arith.constant 0 : i32
    %c0_i32_0 = arith.constant 0 : i32
    %c0_i32_1 = arith.constant 0 : i32
    return %c0_i32, %c0_i32_0 : i32, i32
  }
  func.func @transform_6(%arg0: i32) -> (i32, i32) {
    %c0_i32 = arith.constant 0 : i32
    %c0_i32_0 = arith.constant 0 : i32
    %c0_i32_1 = arith.constant 0 : i32
    return %c0_i32, %c0_i32_0 : i32, i32
  }
  func.func @transform_7(%arg0: i32) -> (i32, i32) {
    %c0_i32 = arith.constant 0 : i32
    %c0_i32_0 = arith.constant 0 : i32
    %c0_i32_1 = arith.constant 0 : i32
    return %c0_i32, %c0_i32_0 : i32, i32
  }
  func.func @transform_8(%arg0: i32) -> (i32, i32) {
    %c0_i32 = arith.constant 0 : i32
    %c0_i32_0 = arith.constant 0 : i32
    %c0_i32_1 = arith.constant 0 : i32
    return %c0_i32, %c0_i32_0 : i32, i32
  }
  func.func @transform_9(%arg0: i32) -> (i32, i32) {
    %c0_i32 = arith.constant 0 : i32
    %c0_i32_0 = arith.constant 0 : i32
    return %arg0, %c0_i32 : i32, i32
  }
}

</mosaic_0001>

<bundles_post_ra>
// kernel: tpu_custom_call.1
= control target key start
LH: loop header
LB: loop body
LE: loop exit
PB: predicated region body
PF: predicated region fallthrough
CT: control target
= control target key end

     0   :  { %14 = vsyncpa [#allocation3], 0  ;;  %s1086_s0 = inlined_call_operand.vmem [shape: f32[64,2], index: 0, kind: input, shape index: {}]   ;;  %s1087_s1 = inlined_call_operand.vmem [shape: f32[2,128], index: 1, kind: input, shape index: {}]   ;;  %s1088_s2 = inlined_call_operand.vmem [shape: f32[1,128], index: 2, kind: input, shape index: {}]   ;;  %s1089_s3 = inlined_call_operand.vmem [shape: bf16[128,128], index: 3, kind: input, shape index: {}]   ;;  %s1090_s4 = inlined_call_operand.vmem [shape: f32[1,128], index: 4, kind: input, shape index: {}]   ;;  %s1091_s5 = inlined_call_operand.hbm [shape: bf16[128,128], index: 5, kind: input, shape index: {}]   ;;  %s1092_s6 = inlined_call_operand.vmem [shape: f32[1,128], index: 6, kind: input, shape index: {}]   ;;  %s1093_s7 = inlined_call_operand.hbm [shape: bf16[128,128], index: 7, kind: input, shape index: {}]   ;;  %s1094_s8 = inlined_call_operand.vmem [shape: f32[1,128], index: 8, kind: input, shape index: {}]   ;;  %s1095_s9 = inlined_call_operand.hbm [shape: f32[64,128], index: 9, kind: output, shape index: {}]  }
   0x1   :  { %15 = vsyncpa [#allocation6], 0 }
   0x2   :  { %16 = vsyncpa [#allocation4], 0  ;;  %s928_s30 = smov [#allocation2]   ;;  %s856_s13 = scalar_lea.hbm %s1091_s5, 1024 }
   0x3   :  { %s32_s10 = sshll.u32 %s928_s30, 4  ;;  %p857_p0 = scmp.ne.s32.totalorder %s1091_s5, %s856_s13  ;;  %s33_s10 = int_to_ptr.vmem [resolvable:$true] %s32_s10 }
   0x4   :  { %p860_p1 = scmp.lt.u32.totalorder %s856_s13, %s1091_s5 }
   0x6   :  { %p862_p2 = pnand %p860_p1, %p857_p0 }
   0x8   :  { %865 = shalt.err (!%p862_p2)
}
   0x9   :  { %s866_s18 = scalar_lea.vmem %s33_s10, 1024  ;;  %p871_p4 = scmp.lt.s32.totalorder %s33_s10, %s33_s10 }
   0xa   :  { %p867_p3 = scmp.ne.s32.totalorder %s33_s10, %s866_s18  ;;  %p872_p5 = scmp.lt.s32.totalorder %s866_s18, %s866_s18 }
   0xc   :  { %p873_p6 = por %p872_p5, %p871_p4 }
   0xe   :  { %p874_p7 = pnand %p873_p6, %p867_p3 }
  0x10   :  { %877 = shalt.err (!%p874_p7)
}
  0x11   :  { %s929_s19 = smov 64   ;;  %s930_s20 = smov 4  }
  0x12   :  { %38 = dma.hbm_to_vmem [thread:$0]  %s1091_s5, 1024, %s33_s10, [#allocation3], %s929_s19, %s929_s19, %s930_s20  }
  0x13   :  { %s931_s23 = smov [#allocation5]   ;;  %s878_s27 = scalar_lea.hbm %s1093_s7, 1024 }
  0x14   :  { %s46_s24 = sshll.u32 %s931_s23, 4  ;;  %p879_p8 = scmp.ne.s32.totalorder %s1093_s7, %s878_s27  ;;  %s47_s24 = int_to_ptr.vmem [resolvable:$true] %s46_s24 }
  0x15   :  { %p882_p9 = scmp.lt.u32.totalorder %s878_s27, %s1093_s7 }
  0x17   :  { %p884_p10 = pnand %p882_p9, %p879_p8 }
  0x19   :  { %887 = shalt.err (!%p884_p10)
}
  0x1a   :  { %s888_s12 = scalar_lea.vmem %s47_s24, 1024  ;;  %p893_p12 = scmp.lt.s32.totalorder %s47_s24, %s47_s24 }
  0x1b   :  { %p889_p11 = scmp.ne.s32.totalorder %s47_s24, %s888_s12  ;;  %p894_p13 = scmp.lt.s32.totalorder %s888_s12, %s888_s12 }
  0x1d   :  { %p895_p0 = por %p894_p13, %p893_p12 }
  0x1f   :  { %p896_p1 = pnand %p895_p0, %p889_p11 }
  0x21   :  { %899 = shalt.err (!%p896_p1)
}
  0x22   :  { %52 = dma.hbm_to_vmem [thread:$0]  %s1093_s7, 1024, %s47_s24, [#allocation6], %s929_s19, %s929_s19, %s930_s20  }
  0x23   :  { %922 = dma.done.wait [#allocation3], 1024  }
  0x24   :  { %923 = vsyncadd [#allocation3], 4294966272 }
  0x25   :  { %924 = dma.done.wait [#allocation6], 1024  }
  0x26   :  { %925 = vsyncadd [#allocation6], 4294966272  ;;  %v932_v0 = vmov 1   ;;  %v933_v1 = vmov 0   ;;  %v62_v2 = vld [vmem:[%s1086_s0] sm:$0xff]  ;;  %v63_v3 = vld [vmem:[%s1086_s0 + $0x8] sm:$0xff]  ;;  %v111_v24 = vlaneseq }
  0x27   :  { %822 = vset.pattern.permute.xlu1 %v932_v0  ;;  %821 = vset.pattern.permute.xlu0 %v933_v1  ;;  %v64_v4 = vld [vmem:[%s1086_s0 + $0x10] sm:$0xff]  ;;  %v832_v5 = vld [vmem:[%s1089_s3] sm:$0xff]   ;;  %v833_v6 = vld [vmem:[%s1089_s3 + $0x8] sm:$0xff]   ;;  %s934_s25 = smov [#allocation7]  }
  0x28   :  { %124 = vperm.xlu1 %822, %v62_v2   ;;  %73 = vperm.xlu0 %821, %v62_v2   ;;  %v65_v7 = vld [vmem:[%s1086_s0 + $0x18] sm:$0xff]  ;;  %v834_v8 = vld [vmem:[%s1089_s3 + $0x10] sm:$0xff]   ;;  %v67_v10 = vld [vmem:[%s1086_s0 + $0x28] sm:$0xff]  ;;  %v112_v25 = vshrl.u32 %v111_v24, 7  ;;  %s647_s26 = sshll.u32 %s934_s25, 4  ;;  %s648_s26 = int_to_ptr.vmem [resolvable:$true] %s647_s26 }
  0x29   :  { %724 = vmatprep.subr.bf16.mxu0 %v832_v5  ;;  %v835_v9 = vld [vmem:[%s1089_s3 + $0x18] sm:$0xff]   ;;  %v66_v11 = vld [vmem:[%s1086_s0 + $0x20] sm:$0xff]  ;;  %v68_v13 = vld [vmem:[%s1086_s0 + $0x30] sm:$0xff]  ;;  %p905_p3 = scmp.lt.s32.totalorder %s648_s26, %s648_s26 }
  0x2a   :  { %725 = vmatpush3.bf16.msra.mxu0 %v832_v5  ;;  %v836_v12 = vld [vmem:[%s1089_s3 + $0x20] sm:$0xff]   ;;  %v837_v14 = vld [vmem:[%s1089_s3 + $0x28] sm:$0xff]   ;;  %v838_v15 = vld [vmem:[%s1089_s3 + $0x30] sm:$0xff]   ;;  %v157_v26 = vsub.s32 1, %v112_v25  ;;  %v113_v27 = vsub.s32 0, %v112_v25 }
  0x2b   :  { %726 = vmatprep.subr.bf16.mxu0 %v833_v6  ;;  %v839_v16 = vld [vmem:[%s1089_s3 + $0x38] sm:$0xff]   ;;  %v840_v18 = vld [vmem:[#allocation2] sm:$0xff]   ;;  %v841_v19 = vld [vmem:[#allocation2 + $0x8] sm:$0xff]  }
  0x2c   :  { %128 = vperm.xlu1 %822, %v63_v3   ;;  %824 = vset.pattern.permute.xlu0 %v932_v0  ;;  %v69_v17 = vld [vmem:[%s1086_s0 + $0x38] sm:$0xff]  ;;  %v843_v21 = vld [vmem:[#allocation2 + $0x18] sm:$0xff]   ;;  %v844_v22 = vld [vmem:[#allocation2 + $0x20] sm:$0xff]  }
  0x2d   :  { %132 = vperm.xlu0 %824, %v64_v4   ;;  %748 = vmatprep.subr.bf16.mxu1 %v840_v18  ;;  %v842_v20 = vld [vmem:[#allocation2 + $0x10] sm:$0xff]   ;;  %v845_v23 = vld [vmem:[#allocation2 + $0x28] sm:$0xff]   ;;  %v70_v28 = vld [vmem:[%s1087_s1] sm:$0x3] }
  0x2e   :  { %727 = vmatpush3.bf16.msra.mxu0 %v833_v6  ;;  %749 = vmatpush3.bf16.msra.mxu1 %v840_v18  ;;  %v158_v30 = vrot.slane %v70_v28, %v157_v26  ;;  %v114_v31 = vrot.slane %v70_v28, %v113_v27  ;;  %v660_v40 = vld [vmem:[%s1088_s2] ss:$0 sm:$0xff]  ;;  %v846_v28 = vld [vmem:[#allocation2 + $0x30] sm:$0xff]  }
  0x2f   :  { %728 = vmatprep.subr.bf16.mxu0 %v834_v8  ;;  %750 = vmatprep.subr.bf16.mxu1 %v841_v19 }
  0x30   :  { %823 = vset.pattern.permute.xlu1 %v933_v1 }
  0x31   :  { %88 = vperm.xlu1 %823, %v65_v7   ;;  %825 = vset.pattern.permute.xlu0 %v933_v1 }
  0x32   :  { %78 = vperm.xlu0 %825, %v63_v3   ;;  %729 = vmatpush3.bf16.msra.mxu0 %v834_v8 }
  0x33   :  { %730 = vmatprep.subr.bf16.mxu0 %v835_v9  ;;  %751 = vmatpush3.bf16.msra.mxu1 %v841_v19 }
  0x34   :  { %752 = vmatprep.subr.bf16.mxu1 %v842_v20 }
  0x35   :  { %826 = vset.pattern.permute.xlu1 %v932_v0 }
  0x36   :  { %136 = vperm.xlu1 %826, %v65_v7   ;;  %83 = vperm.xlu0 %825, %v64_v4  }
  0x37   :  { %731 = vmatpush3.bf16.msra.mxu0 %v835_v9  ;;  %753 = vmatpush3.bf16.msra.mxu1 %v842_v20 }
  0x38   :  { %732 = vmatprep.subr.bf16.mxu0 %v836_v12  ;;  %754 = vmatprep.subr.bf16.mxu1 %v843_v21 }
  0x3a   :  { %827 = vset.pattern.permute.xlu1 %v933_v1  ;;  %98 = vperm.xlu0 %825, %v67_v10  }
  0x3b   :  { %93 = vperm.xlu1 %827, %v66_v11   ;;  %733 = vmatpush3.bf16.msra.mxu0 %v836_v12 }
  0x3c   :  { %734 = vmatprep.subr.bf16.mxu0 %v837_v14  ;;  %755 = vmatpush3.bf16.msra.mxu1 %v843_v21 }
  0x3d   :  { %756 = vmatprep.subr.bf16.mxu1 %v844_v22 }
  0x3e   :  { %103 = vperm.xlu0 %825, %v68_v13  }
  0x3f   :  { %828 = vset.pattern.permute.xlu1 %v932_v0  ;;  %735 = vmatpush3.bf16.msra.mxu0 %v837_v14 }
  0x40   :  { %140 = vperm.xlu1 %828, %v66_v11   ;;  %736 = vmatprep.subr.bf16.mxu0 %v838_v15 }
  0x41   :  { %757 = vmatpush3.bf16.msra.mxu1 %v844_v22 }
  0x42   :  { %830 = vset.pattern.permute.xlu0 %v932_v0  ;;  %758 = vmatprep.subr.bf16.mxu1 %v845_v23 }
  0x43   :  { %148 = vperm.xlu0 %830, %v68_v13   ;;  %737 = vmatpush3.bf16.msra.mxu0 %v838_v15 }
  0x44   :  { %144 = vperm.xlu1 %828, %v67_v10   ;;  %738 = vmatprep.subr.bf16.mxu0 %v839_v16 }
  0x45   :  { %759 = vmatpush3.bf16.msra.mxu1 %v845_v23 }
  0x46   :  { %760 = vmatprep.subr.bf16.mxu1 %v846_v28 }
  0x47   :  { %739 = vmatpush3.bf16.msra.mxu0 %v839_v16 }
  0x48   :  { %829 = vset.pattern.permute.xlu1 %v933_v1 }
  0x49   :  { %108 = vperm.xlu1 %829, %v69_v17   ;;  %761 = vmatpush3.bf16.msra.mxu1 %v846_v28 }
  0x4d   :  { %831 = vset.pattern.permute.xlu1 %v932_v0 }
  0x4e   :  { %152 = vperm.xlu1 %831, %v69_v17  }
  0xa7   :  { %v125_v29 = vpop.permute.xlu1 %124  ;;  %v74_v32 = vpop.permute.xlu0 %73 }
  0xa8   :  { %v159_v34 = vmul.f32 %v158_v30, %v125_v29  ;;  %v115_v35 = vmul.f32 %v114_v31, %v74_v32  ;;  %v847_v29 = vld [vmem:[#allocation2 + $0x38] sm:$0xff]   ;;  %v848_v32 = vld [vmem:[#allocation5] sm:$0xff]  }
  0xa9   :  { %762 = vmatprep.subr.bf16.mxu1 %v847_v29  ;;  %772 = vmatprep.subr.bf16.mxu0 %v848_v32 }
  0xaa   :  { %v167_v37 = vadd.f32 %v159_v34, %v115_v35  ;;  %763 = vmatpush3.bf16.msra.mxu1 %v847_v29  ;;  %v852_v34 = vld [vmem:[#allocation5 + $0x20] sm:$0xff]   ;;  %v853_v35 = vld [vmem:[#allocation5 + $0x28] sm:$0xff]  }
  0xab   :  { %v129_v33 = vpop.permute.xlu1 %128  ;;  %796 = vmatprep.subr.bf16.mxu1 %v848_v32 }
  0xac   :  { %v133_v36 = vpop.permute.xlu0 %132  ;;  %v160_v41 = vmul.f32 %v158_v30, %v129_v33  ;;  %v182_v45 = vadd.f32 %v660_v40, %v167_v37  ;;  %v849_v33 = vld [vmem:[#allocation5 + $0x8] sm:$0xff]  }
  0xad   :  { %v161_v43 = vmul.f32 %v158_v30, %v133_v36  ;;  %v661_v36 = vld [vmem:[%s1090_s4] ss:$0 sm:$0xff] }
  0xae   :  { %v190_v54 = vmax.f32 %v182_v45, 0.0 }
  0xb0   :  { %v89_v38 = vpop.permute.xlu1 %88 }
  0xb1   :  { %v79_v39 = vpop.permute.xlu0 %78  ;;  %v118_v48 = vmul.f32 %v114_v31, %v89_v38 }
  0xb2   :  { %v116_v42 = vmul.f32 %v114_v31, %v79_v39 }
  0xb4   :  { %v168_v44 = vadd.f32 %v160_v41, %v116_v42 }
  0xb5   :  { %v137_v46 = vpop.permute.xlu1 %136  ;;  %v84_v47 = vpop.permute.xlu0 %83 }
  0xb6   :  { %v162_v49 = vmul.f32 %v158_v30, %v137_v46  ;;  %v117_v50 = vmul.f32 %v114_v31, %v84_v47  ;;  %v183_v51 = vadd.f32 %v660_v40, %v168_v44 }
  0xb8   :  { %v170_v52 = vadd.f32 %v162_v49, %v118_v48  ;;  %v169_v53 = vadd.f32 %v161_v43, %v117_v50  ;;  %v191_v55 = vmax.f32 %v183_v51, 0.0 }
  0xb9   :  { %v99_v56 = vpop.permute.xlu0 %98 }
  0xba   :  { %v185_v57 = vadd.f32 %v660_v40, %v170_v52  ;;  %v184_v58 = vadd.f32 %v660_v40, %v169_v53  ;;  %v94_v59 = vpop.permute.xlu1 %93  ;;  %v198_v60 = vpack.c.bf16 %v191_v55, %v190_v54  ;;  %v120_v6 = vmul.f32 %v114_v31, %v99_v56 }
  0xbb   :  { %v119_v2 = vmul.f32 %v114_v31, %v94_v59 }
  0xbc   :  { %v193_v61 = vmax.f32 %v185_v57, 0.0  ;;  %v192_v62 = vmax.f32 %v184_v58, 0.0  ;;  %740 = vmatprep.mubr.bf16.mxu0 %v198_v60 }
  0xbd   :  { %v104_v0 = vpop.permute.xlu0 %103 }
  0xbe   :  { %v199_v63 = vpack.c.bf16 %v193_v61, %v192_v62  ;;  %v121_v14 = vmul.f32 %v114_v31, %v104_v0 }
  0xbf   :  { %v141_v1 = vpop.permute.xlu1 %140 }
  0xc0   :  { %v163_v3 = vmul.f32 %v158_v30, %v141_v1  ;;  %741 = vmatmul.mubr.bf16.vlgmr.msra.gmra.mrb[0].mxu0 %v199_v63  ;;  %v854_v1 = vld [vmem:[#allocation5 + $0x30] sm:$0xff]  }
  0xc1   :  { %773 = vmatpush3.bf16.msra.mxu0 %v848_v32 }
  0xc2   :  { %v171_v4 = vadd.f32 %v163_v3, %v119_v2  ;;  %v149_v8 = vpop.permute.xlu0 %148  ;;  %774 = vmatprep.subr.bf16.mxu0 %v849_v33  ;;  %v855_v2 = vld [vmem:[#allocation5 + $0x38] sm:$0xff]  }
  0xc3   :  { %v145_v5 = vpop.permute.xlu1 %144  ;;  %v165_v11 = vmul.f32 %v158_v30, %v149_v8  ;;  %v670_v3 = vld [vmem:[%s1092_s6] ss:$0 sm:$0xff] }
  0xc4   :  { %v164_v7 = vmul.f32 %v158_v30, %v145_v5  ;;  %v186_v9 = vadd.f32 %v660_v40, %v171_v4 }
  0xc5   :  { %v173_v17 = vadd.f32 %v165_v11, %v121_v14  ;;  %775 = vmatpush3.bf16.msra.mxu0 %v849_v33 }
  0xc6   :  { %v172_v10 = vadd.f32 %v164_v7, %v120_v6  ;;  %v194_v15 = vmax.f32 %v186_v9, 0.0 }
  0xc7   :  { %v188_v22 = vadd.f32 %v660_v40, %v173_v17 }
  0xc8   :  { %v187_v12 = vadd.f32 %v660_v40, %v172_v10  ;;  %v109_v13 = vpop.permute.xlu1 %108 }
  0xc9   :  { %v122_v20 = vmul.f32 %v114_v31, %v109_v13  ;;  %v196_v25 = vmax.f32 %v188_v22, 0.0  ;;  %v851_v31 = vld [vmem:[#allocation5 + $0x18] sm:$0xff]  }
  0xca   :  { %v195_v16 = vmax.f32 %v187_v12, 0.0 }
  0xcc   :  { %v200_v18 = vpack.c.bf16 %v195_v16, %v194_v15 }
  0xcd   :  { %v153_v19 = vpop.permute.xlu1 %152 }
  0xce   :  { %v166_v21 = vmul.f32 %v158_v30, %v153_v19  ;;  %744 = vmatprep.mubr.bf16.mxu0 %v200_v18  ;;  %v850_v30 = vld [vmem:[#allocation5 + $0x10] sm:$0xff]  }
  0xcf   :  { %776 = vmatprep.subr.bf16.mxu0 %v850_v30 }
  0xd0   :  { %v174_v23 = vadd.f32 %v166_v21, %v122_v20  ;;  %777 = vmatpush3.bf16.msra.mxu0 %v850_v30 }
  0xd1   :  { %778 = vmatprep.subr.bf16.mxu0 %v851_v31 }
  0xd2   :  { %v189_v24 = vadd.f32 %v660_v40, %v174_v23 }
  0xd4   :  { %v197_v26 = vmax.f32 %v189_v24, 0.0  ;;  %779 = vmatpush3.bf16.msra.mxu0 %v851_v31 }
  0xd5   :  { %780 = vmatprep.subr.bf16.mxu0 %v852_v34 }
  0xd6   :  { %v201_v27 = vpack.c.bf16 %v197_v26, %v196_v25 }
  0xd8   :  { %745 = vmatmul.mubr.bf16.gmra.mrb[4].mxu0 %v201_v27 }
  0xd9   :  { %781 = vmatpush3.bf16.msra.mxu0 %v852_v34 }
  0xda   :  { %782 = vmatprep.subr.bf16.mxu0 %v853_v35 }
  0xdd   :  { %783 = vmatpush3.bf16.msra.mxu0 %v853_v35 }
  0xde   :  { %784 = vmatprep.subr.bf16.mxu0 %v854_v1 }
  0xe1   :  { %785 = vmatpush3.bf16.msra.mxu0 %v854_v1 }
  0xe2   :  { %786 = vmatprep.subr.bf16.mxu0 %v855_v2 }
  0xe5   :  { %787 = vmatpush3.bf16.msra.mxu0 %v855_v2 }
 0x193   :  { %v742_v37 = vpop.f32.mrb[0].mxu0 }
 0x194   :  { %v316_v38 = vadd.f32 %v742_v37, %v661_v36  ;;  %v307_v39 = vpop.f32.mrb[1].mxu0 }
 0x195   :  { %v308_v40 = vadd.f32 %v661_v36, %v307_v39  ;;  %v743_v41 = vpop.f32.mrb[2].mxu0 }
 0x196   :  { %v319_v42 = vadd.f32 %v743_v41, %v661_v36  ;;  %v310_v43 = vpop.f32.mrb[3].mxu0  ;;  %v340_v45 = vmax.f32 %v316_v38, 0.0 }
 0x197   :  { %v311_v44 = vadd.f32 %v661_v36, %v310_v43  ;;  %v338_v47 = vmax.f32 %v308_v40, 0.0 }
 0x198   :  { %v341_v46 = vmax.f32 %v319_v42, 0.0 }
 0x199   :  { %v339_v48 = vmax.f32 %v311_v44, 0.0 }
 0x19a   :  { %v347_v49 = vpack.c.bf16 %v341_v46, %v340_v45 }
 0x19b   :  { %v346_v50 = vpack.c.bf16 %v339_v48, %v338_v47 }
 0x19d   :  { %764 = vmatprep.mubr.bf16.mxu1 %v346_v50 }
 0x19e   :  { %765 = vmatmul.mubr.bf16.vlgmr.msra.gmra.mrb[0].mxu1 %v347_v49 }
 0x19f   :  { %804 = vmatpush3.bf16.msra.mxu1 %v848_v32 }
 0x1a0   :  { %797 = vmatprep.subr.bf16.mxu1 %v849_v33 }
 0x1a3   :  { %805 = vmatpush3.bf16.msra.mxu1 %v849_v33 }
 0x1a4   :  { %798 = vmatprep.subr.bf16.mxu1 %v850_v30 }
 0x1a7   :  { %806 = vmatpush3.bf16.msra.mxu1 %v850_v30  ;;  %v679_v30 = vld [vmem:[%s1094_s8] ss:$0 sm:$0xff]  ;;  %s900_s8 = scalar_lea.vmem %s648_s26, 1024 }
 0x1a8   :  { %799 = vmatprep.subr.bf16.mxu1 %v851_v31  ;;  %p901_p2 = scmp.ne.s32.totalorder %s648_s26, %s900_s8  ;;  %p906_p4 = scmp.lt.s32.totalorder %s900_s8, %s900_s8 }
 0x1aa   :  { %p907_p5 = por %p906_p4, %p905_p3 }
 0x1ab   :  { %v746_v51 = vpop.f32.mrb[4].mxu0  ;;  %807 = vmatpush3.bf16.msra.mxu1 %v851_v31 }
 0x1ac   :  { %v332_v52 = vadd.f32 %v746_v51, %v661_v36  ;;  %v323_v53 = vpop.f32.mrb[5].mxu0  ;;  %800 = vmatprep.subr.bf16.mxu1 %v852_v34  ;;  %p908_p6 = pnand %p907_p5, %p901_p2 }
 0x1ad   :  { %v324_v54 = vadd.f32 %v661_v36, %v323_v53  ;;  %v747_v55 = vpop.f32.mrb[6].mxu0 }
 0x1ae   :  { %v335_v56 = vadd.f32 %v747_v55, %v661_v36  ;;  %v326_v57 = vpop.f32.mrb[7].mxu0  ;;  %v344_v59 = vmax.f32 %v332_v52, 0.0 }
 0x1af   :  { %v327_v58 = vadd.f32 %v661_v36, %v326_v57  ;;  %808 = vmatpush3.bf16.msra.mxu1 %v852_v34  ;;  %v342_v61 = vmax.f32 %v324_v54, 0.0 }
 0x1b0   :  { %v345_v60 = vmax.f32 %v335_v56, 0.0  ;;  %801 = vmatprep.subr.bf16.mxu1 %v853_v35 }
 0x1b1   :  { %v343_v62 = vmax.f32 %v327_v58, 0.0 }
 0x1b2   :  { %v349_v63 = vpack.c.bf16 %v345_v60, %v344_v59 }
 0x1b3   :  { %v348_v0 = vpack.c.bf16 %v343_v62, %v342_v61  ;;  %809 = vmatpush3.bf16.msra.mxu1 %v853_v35 }
 0x1b4   :  { %802 = vmatprep.subr.bf16.mxu1 %v854_v1 }
 0x1b5   :  { %768 = vmatprep.mubr.bf16.mxu1 %v348_v0 }
 0x1b6   :  { %769 = vmatmul.mubr.bf16.gmra.mrb[4].mxu1 %v349_v63 }
 0x1b7   :  { %810 = vmatpush3.bf16.msra.mxu1 %v854_v1 }
 0x1b8   :  { %803 = vmatprep.subr.bf16.mxu1 %v855_v2 }
 0x1bb   :  { %811 = vmatpush3.bf16.msra.mxu1 %v855_v2 }
 0x271   :  { %v766_v4 = vpop.f32.mrb[0].mxu1 }
 0x272   :  { %v464_v5 = vadd.f32 %v766_v4, %v670_v3  ;;  %v455_v6 = vpop.f32.mrb[1].mxu1 }
 0x273   :  { %v456_v7 = vadd.f32 %v670_v3, %v455_v6  ;;  %v767_v8 = vpop.f32.mrb[2].mxu1 }
 0x274   :  { %v467_v9 = vadd.f32 %v767_v8, %v670_v3  ;;  %v458_v10 = vpop.f32.mrb[3].mxu1  ;;  %v488_v12 = vmax.f32 %v464_v5, 0.0 }
 0x275   :  { %v459_v11 = vadd.f32 %v670_v3, %v458_v10  ;;  %v486_v14 = vmax.f32 %v456_v7, 0.0 }
 0x276   :  { %v489_v13 = vmax.f32 %v467_v9, 0.0 }
 0x277   :  { %v487_v15 = vmax.f32 %v459_v11, 0.0 }
 0x278   :  { %v495_v16 = vpack.c.bf16 %v489_v13, %v488_v12 }
 0x279   :  { %v494_v17 = vpack.c.bf16 %v487_v15, %v486_v14 }
 0x27b   :  { %788 = vmatprep.mubr.bf16.mxu0 %v494_v17 }
 0x27c   :  { %789 = vmatmul.mubr.bf16.vlgmr.msra.gmra.mrb[8].mxu0 %v495_v16 }
 0x289   :  { %v770_v18 = vpop.f32.mrb[4].mxu1 }
 0x28a   :  { %v480_v19 = vadd.f32 %v770_v18, %v670_v3  ;;  %v471_v20 = vpop.f32.mrb[5].mxu1 }
 0x28b   :  { %v472_v21 = vadd.f32 %v670_v3, %v471_v20  ;;  %v771_v22 = vpop.f32.mrb[6].mxu1 }
 0x28c   :  { %v483_v23 = vadd.f32 %v771_v22, %v670_v3  ;;  %v474_v24 = vpop.f32.mrb[7].mxu1  ;;  %v492_v26 = vmax.f32 %v480_v19, 0.0 }
 0x28d   :  { %v475_v25 = vadd.f32 %v670_v3, %v474_v24  ;;  %v490_v28 = vmax.f32 %v472_v21, 0.0 }
 0x28e   :  { %v493_v27 = vmax.f32 %v483_v23, 0.0 }
 0x28f   :  { %v491_v29 = vmax.f32 %v475_v25, 0.0 }
 0x290   :  { %v497_v32 = vpack.c.bf16 %v493_v27, %v492_v26 }
 0x291   :  { %v496_v33 = vpack.c.bf16 %v491_v29, %v490_v28 }
 0x293   :  { %792 = vmatprep.mubr.bf16.mxu1 %v496_v33 }
 0x294   :  { %793 = vmatmul.mubr.bf16.vlgmr.msra.gmra.mrb[8].mxu1 %v497_v32 }
 0x34f   :  { %v790_v31 = vpop.f32.mrb[8].mxu0 }
 0x350   :  { %v612_v34 = vadd.f32 %v790_v31, %v679_v30  ;;  %v603_v35 = vpop.f32.mrb[9].mxu0 }
 0x351   :  { %v604_v36 = vadd.f32 %v679_v30, %v603_v35  ;;  %v791_v37 = vpop.f32.mrb[10].mxu0 }
 0x352   :  { %636 = vst [vmem:[#allocation7 + $0x10] sm:$0xff] %v612_v34  ;;  %v615_v38 = vadd.f32 %v791_v37, %v679_v30  ;;  %v606_v39 = vpop.f32.mrb[11].mxu0 }
 0x353   :  { %634 = vst [vmem:[#allocation7] sm:$0xff] %v604_v36  ;;  %v607_v40 = vadd.f32 %v679_v30, %v606_v39 }
 0x354   :  { %637 = vst [vmem:[#allocation7 + $0x18] sm:$0xff] %v615_v38 }
 0x355   :  { %635 = vst [vmem:[#allocation7 + $0x8] sm:$0xff] %v607_v40 }
 0x367   :  { %v794_v41 = vpop.f32.mrb[8].mxu1 }
 0x368   :  { %v628_v42 = vadd.f32 %v794_v41, %v679_v30  ;;  %v619_v43 = vpop.f32.mrb[9].mxu1 }
 0x369   :  { %v620_v44 = vadd.f32 %v679_v30, %v619_v43  ;;  %v795_v45 = vpop.f32.mrb[10].mxu1 }
 0x36a   :  { %640 = vst [vmem:[#allocation7 + $0x30] sm:$0xff] %v628_v42  ;;  %v631_v46 = vadd.f32 %v795_v45, %v679_v30  ;;  %v622_v47 = vpop.f32.mrb[11].mxu1 }
 0x36b   :  { %638 = vst [vmem:[#allocation7 + $0x20] sm:$0xff] %v620_v44  ;;  %v623_v48 = vadd.f32 %v679_v30, %v622_v47 }
 0x36c   :  { %641 = vst [vmem:[#allocation7 + $0x38] sm:$0xff] %v631_v46 }
 0x36d   :  { %639 = vst [vmem:[#allocation7 + $0x28] sm:$0xff] %v623_v48 }
 0x36e   :  { %911 = shalt.err (!%p908_p6)
}
 0x36f   :  { %s912_s29 = scalar_lea.hbm %s1095_s9, 1024 }
 0x370   :  { %p913_p7 = scmp.ne.s32.totalorder %s1095_s9, %s912_s29  ;;  %p916_p8 = scmp.lt.u32.totalorder %s912_s29, %s1095_s9 }
 0x372   :  { %p918_p9 = pnand %p916_p8, %p913_p7 }
 0x374   :  { %921 = shalt.err (!%p918_p9)
}
 0x375   :  { %s935_s10 = smov 128   ;;  %s936_s13 = smov 8  }
 0x376   :  { %653 = dma.vmem_to_hbm [thread:$0]  %s648_s26, 1024, %s1095_s9, [#allocation4], %s935_s10, %s935_s10, %s936_s13  }
 0x377   :  { %926 = dma.done.wait [#allocation4], 1024  }
 0x378   :  { %927 = vsyncadd [#allocation4], 4294966272 }
 0x379   :  { %657 = vsyncpa [#allocation3], 1 }
 0x37a   :  { %658 = vsyncpa [#allocation6], 1 }
 0x37b   :  { %659 = vsyncpa [#allocation4], 1 }

// kernel: tpu_custom_call.1
= control target key start
LH: loop header
LB: loop body
LE: loop exit
PB: predicated region body
PF: predicated region fallthrough
CT: control target
= control target key end

     0   :  { %14 = vsyncpa [#allocation3], 0  ;;  %s1086_s0 = inlined_call_operand.vmem [shape: f32[64,2], index: 0, kind: input, shape index: {}]   ;;  %s1087_s1 = inlined_call_operand.vmem [shape: f32[2,128], index: 1, kind: input, shape index: {}]   ;;  %s1088_s2 = inlined_call_operand.vmem [shape: f32[1,128], index: 2, kind: input, shape index: {}]   ;;  %s1089_s3 = inlined_call_operand.vmem [shape: bf16[128,128], index: 3, kind: input, shape index: {}]   ;;  %s1090_s4 = inlined_call_operand.vmem [shape: f32[1,128], index: 4, kind: input, shape index: {}]   ;;  %s1091_s5 = inlined_call_operand.hbm [shape: bf16[128,128], index: 5, kind: input, shape index: {}]   ;;  %s1092_s6 = inlined_call_operand.vmem [shape: f32[1,128], index: 6, kind: input, shape index: {}]   ;;  %s1093_s7 = inlined_call_operand.hbm [shape: bf16[128,128], index: 7, kind: input, shape index: {}]   ;;  %s1094_s8 = inlined_call_operand.vmem [shape: f32[1,128], index: 8, kind: input, shape index: {}]   ;;  %s1095_s9 = inlined_call_operand.hbm [shape: f32[64,128], index: 9, kind: output, shape index: {}]  }
   0x1   :  { %15 = vsyncpa [#allocation6], 0 }
   0x2   :  { %16 = vsyncpa [#allocation4], 0  ;;  %s928_s30 = smov [#allocation2]   ;;  %s856_s13 = scalar_lea.hbm %s1091_s5, 1024 }
   0x3   :  { %s32_s10 = sshll.u32 %s928_s30, 4  ;;  %p857_p0 = scmp.ne.s32.totalorder %s1091_s5, %s856_s13  ;;  %s33_s10 = int_to_ptr.vmem [resolvable:$true] %s32_s10 }
   0x4   :  { %p860_p1 = scmp.lt.u32.totalorder %s856_s13, %s1091_s5 }
   0x6   :  { %p862_p2 = pnand %p860_p1, %p857_p0 }
   0x8   :  { %865 = shalt.err (!%p862_p2)
}
   0x9   :  { %s866_s18 = scalar_lea.vmem %s33_s10, 1024  ;;  %p871_p4 = scmp.lt.s32.totalorder %s33_s10, %s33_s10 }
   0xa   :  { %p867_p3 = scmp.ne.s32.totalorder %s33_s10, %s866_s18  ;;  %p872_p5 = scmp.lt.s32.totalorder %s866_s18, %s866_s18 }
   0xc   :  { %p873_p6 = por %p872_p5, %p871_p4 }
   0xe   :  { %p874_p7 = pnand %p873_p6, %p867_p3 }
  0x10   :  { %877 = shalt.err (!%p874_p7)
}
  0x11   :  { %s929_s19 = smov 64   ;;  %s930_s20 = smov 4  }
  0x12   :  { %38 = dma.hbm_to_vmem [thread:$0]  %s1091_s5, 1024, %s33_s10, [#allocation3], %s929_s19, %s929_s19, %s930_s20  }
  0x13   :  { %s931_s23 = smov [#allocation5]   ;;  %s878_s27 = scalar_lea.hbm %s1093_s7, 1024 }
  0x14   :  { %s46_s24 = sshll.u32 %s931_s23, 4  ;;  %p879_p8 = scmp.ne.s32.totalorder %s1093_s7, %s878_s27  ;;  %s47_s24 = int_to_ptr.vmem [resolvable:$true] %s46_s24 }
  0x15   :  { %p882_p9 = scmp.lt.u32.totalorder %s878_s27, %s1093_s7 }
  0x17   :  { %p884_p10 = pnand %p882_p9, %p879_p8 }
  0x19   :  { %887 = shalt.err (!%p884_p10)
}
  0x1a   :  { %s888_s12 = scalar_lea.vmem %s47_s24, 1024  ;;  %p893_p12 = scmp.lt.s32.totalorder %s47_s24, %s47_s24 }
  0x1b   :  { %p889_p11 = scmp.ne.s32.totalorder %s47_s24, %s888_s12  ;;  %p894_p13 = scmp.lt.s32.totalorder %s888_s12, %s888_s12 }
  0x1d   :  { %p895_p0 = por %p894_p13, %p893_p12 }
  0x1f   :  { %p896_p1 = pnand %p895_p0, %p889_p11 }
  0x21   :  { %899 = shalt.err (!%p896_p1)
}
  0x22   :  { %52 = dma.hbm_to_vmem [thread:$0]  %s1093_s7, 1024, %s47_s24, [#allocation6], %s929_s19, %s929_s19, %s930_s20  }
  0x23   :  { %922 = dma.done.wait [#allocation3], 1024  }
  0x24   :  { %923 = vsyncadd [#allocation3], 4294966272 }
  0x25   :  { %924 = dma.done.wait [#allocation6], 1024  }
  0x26   :  { %925 = vsyncadd [#allocation6], 4294966272  ;;  %v932_v0 = vmov 1   ;;  %v933_v1 = vmov 0   ;;  %v62_v2 = vld [vmem:[%s1086_s0] sm:$0xff]  ;;  %v63_v3 = vld [vmem:[%s1086_s0 + $0x8] sm:$0xff]  ;;  %v111_v24 = vlaneseq }
  0x27   :  { %822 = vset.pattern.permute.xlu1 %v932_v0  ;;  %821 = vset.pattern.permute.xlu0 %v933_v1  ;;  %v64_v4 = vld [vmem:[%s1086_s0 + $0x10] sm:$0xff]  ;;  %v832_v5 = vld [vmem:[%s1089_s3] sm:$0xff]   ;;  %v833_v6 = vld [vmem:[%s1089_s3 + $0x8] sm:$0xff]   ;;  %s934_s25 = smov [#allocation7]  }
  0x28   :  { %124 = vperm.xlu1 %822, %v62_v2   ;;  %73 = vperm.xlu0 %821, %v62_v2   ;;  %v65_v7 = vld [vmem:[%s1086_s0 + $0x18] sm:$0xff]  ;;  %v834_v8 = vld [vmem:[%s1089_s3 + $0x10] sm:$0xff]   ;;  %v67_v10 = vld [vmem:[%s1086_s0 + $0x28] sm:$0xff]  ;;  %v112_v25 = vshrl.u32 %v111_v24, 7  ;;  %s647_s26 = sshll.u32 %s934_s25, 4  ;;  %s648_s26 = int_to_ptr.vmem [resolvable:$true] %s647_s26 }
  0x29   :  { %724 = vmatprep.subr.bf16.mxu0 %v832_v5  ;;  %v835_v9 = vld [vmem:[%s1089_s3 + $0x18] sm:$0xff]   ;;  %v66_v11 = vld [vmem:[%s1086_s0 + $0x20] sm:$0xff]  ;;  %v68_v13 = vld [vmem:[%s1086_s0 + $0x30] sm:$0xff]  ;;  %p905_p3 = scmp.lt.s32.totalorder %s648_s26, %s648_s26 }
  0x2a   :  { %725 = vmatpush3.bf16.msra.mxu0 %v832_v5  ;;  %v836_v12 = vld [vmem:[%s1089_s3 + $0x20] sm:$0xff]   ;;  %v837_v14 = vld [vmem:[%s1089_s3 + $0x28] sm:$0xff]   ;;  %v838_v15 = vld [vmem:[%s1089_s3 + $0x30] sm:$0xff]   ;;  %v157_v26 = vsub.s32 1, %v112_v25  ;;  %v113_v27 = vsub.s32 0, %v112_v25 }
  0x2b   :  { %726 = vmatprep.subr.bf16.mxu0 %v833_v6  ;;  %v839_v16 = vld [vmem:[%s1089_s3 + $0x38] sm:$0xff]   ;;  %v840_v18 = vld [vmem:[#allocation2] sm:$0xff]   ;;  %v841_v19 = vld [vmem:[#allocation2 + $0x8] sm:$0xff]  }
  0x2c   :  { %128 = vperm.xlu1 %822, %v63_v3   ;;  %824 = vset.pattern.permute.xlu0 %v932_v0  ;;  %v69_v17 = vld [vmem:[%s1086_s0 + $0x38] sm:$0xff]  ;;  %v843_v21 = vld [vmem:[#allocation2 + $0x18] sm:$0xff]   ;;  %v844_v22 = vld [vmem:[#allocation2 + $0x20] sm:$0xff]  }
  0x2d   :  { %132 = vperm.xlu0 %824, %v64_v4   ;;  %748 = vmatprep.subr.bf16.mxu1 %v840_v18  ;;  %v842_v20 = vld [vmem:[#allocation2 + $0x10] sm:$0xff]   ;;  %v845_v23 = vld [vmem:[#allocation2 + $0x28] sm:$0xff]   ;;  %v70_v28 = vld [vmem:[%s1087_s1] sm:$0x3] }
  0x2e   :  { %727 = vmatpush3.bf16.msra.mxu0 %v833_v6  ;;  %749 = vmatpush3.bf16.msra.mxu1 %v840_v18  ;;  %v158_v30 = vrot.slane %v70_v28, %v157_v26  ;;  %v114_v31 = vrot.slane %v70_v28, %v113_v27  ;;  %v660_v40 = vld [vmem:[%s1088_s2] ss:$0 sm:$0xff]  ;;  %v846_v28 = vld [vmem:[#allocation2 + $0x30] sm:$0xff]  }
  0x2f   :  { %728 = vmatprep.subr.bf16.mxu0 %v834_v8  ;;  %750 = vmatprep.subr.bf16.mxu1 %v841_v19 }
  0x30   :  { %823 = vset.pattern.permute.xlu1 %v933_v1 }
  0x31   :  { %88 = vperm.xlu1 %823, %v65_v7   ;;  %825 = vset.pattern.permute.xlu0 %v933_v1 }
  0x32   :  { %78 = vperm.xlu0 %825, %v63_v3   ;;  %729 = vmatpush3.bf16.msra.mxu0 %v834_v8 }
  0x33   :  { %730 = vmatprep.subr.bf16.mxu0 %v835_v9  ;;  %751 = vmatpush3.bf16.msra.mxu1 %v841_v19 }
  0x34   :  { %752 = vmatprep.subr.bf16.mxu1 %v842_v20 }
  0x35   :  { %826 = vset.pattern.permute.xlu1 %v932_v0 }
  0x36   :  { %136 = vperm.xlu1 %826, %v65_v7   ;;  %83 = vperm.xlu0 %825, %v64_v4  }
  0x37   :  { %731 = vmatpush3.bf16.msra.mxu0 %v835_v9  ;;  %753 = vmatpush3.bf16.msra.mxu1 %v842_v20 }
  0x38   :  { %732 = vmatprep.subr.bf16.mxu0 %v836_v12  ;;  %754 = vmatprep.subr.bf16.mxu1 %v843_v21 }
  0x3a   :  { %827 = vset.pattern.permute.xlu1 %v933_v1  ;;  %98 = vperm.xlu0 %825, %v67_v10  }
  0x3b   :  { %93 = vperm.xlu1 %827, %v66_v11   ;;  %733 = vmatpush3.bf16.msra.mxu0 %v836_v12 }
  0x3c   :  { %734 = vmatprep.subr.bf16.mxu0 %v837_v14  ;;  %755 = vmatpush3.bf16.msra.mxu1 %v843_v21 }
  0x3d   :  { %756 = vmatprep.subr.bf16.mxu1 %v844_v22 }
  0x3e   :  { %103 = vperm.xlu0 %825, %v68_v13  }
  0x3f   :  { %828 = vset.pattern.permute.xlu1 %v932_v0  ;;  %735 = vmatpush3.bf16.msra.mxu0 %v837_v14 }
  0x40   :  { %140 = vperm.xlu1 %828, %v66_v11   ;;  %736 = vmatprep.subr.bf16.mxu0 %v838_v15 }
  0x41   :  { %757 = vmatpush3.bf16.msra.mxu1 %v844_v22 }
  0x42   :  { %830 = vset.pattern.permute.xlu0 %v932_v0  ;;  %758 = vmatprep.subr.bf16.mxu1 %v845_v23 }
  0x43   :  { %148 = vperm.xlu0 %830, %v68_v13   ;;  %737 = vmatpush3.bf16.msra.mxu0 %v838_v15 }
  0x44   :  { %144 = vperm.xlu1 %828, %v67_v10   ;;  %738 = vmatprep.subr.bf16.mxu0 %v839_v16 }
  0x45   :  { %759 = vmatpush3.bf16.msra.mxu1 %v845_v23 }
  0x46   :  { %760 = vmatprep.subr.bf16.mxu1 %v846_v28 }
  0x47   :  { %739 = vmatpush3.bf16.msra.mxu0 %v839_v16 }
  0x48   :  { %829 = vset.pattern.permute.xlu1 %v933_v1 }
  0x49   :  { %108 = vperm.xlu1 %829, %v69_v17   ;;  %761 = vmatpush3.bf16.msra.mxu1 %v846_v28 }
  0x4d   :  { %831 = vset.pattern.permute.xlu1 %v932_v0 }
  0x4e   :  { %152 = vperm.xlu1 %831, %v69_v17  }
  0xa7   :  { %v125_v29 = vpop.permute.xlu1 %124  ;;  %v74_v32 = vpop.permute.xlu0 %73 }
  0xa8   :  { %v159_v34 = vmul.f32 %v158_v30, %v125_v29  ;;  %v115_v35 = vmul.f32 %v114_v31, %v74_v32  ;;  %v847_v29 = vld [vmem:[#allocation2 + $0x38] sm:$0xff]   ;;  %v848_v32 = vld [vmem:[#allocation5] sm:$0xff]  }
  0xa9   :  { %762 = vmatprep.subr.bf16.mxu1 %v847_v29  ;;  %772 = vmatprep.subr.bf16.mxu0 %v848_v32 }
  0xaa   :  { %v167_v37 = vadd.f32 %v159_v34, %v115_v35  ;;  %763 = vmatpush3.bf16.msra.mxu1 %v847_v29  ;;  %v852_v34 = vld [vmem:[#allocation5 + $0x20] sm:$0xff]   ;;  %v853_v35 = vld [vmem:[#allocation5 + $0x28] sm:$0xff]  }
  0xab   :  { %v129_v33 = vpop.permute.xlu1 %128  ;;  %796 = vmatprep.subr.bf16.mxu1 %v848_v32 }
  0xac   :  { %v133_v36 = vpop.permute.xlu0 %132  ;;  %v160_v41 = vmul.f32 %v158_v30, %v129_v33  ;;  %v182_v45 = vadd.f32 %v660_v40, %v167_v37  ;;  %v849_v33 = vld [vmem:[#allocation5 + $0x8] sm:$0xff]  }
  0xad   :  { %v161_v43 = vmul.f32 %v158_v30, %v133_v36  ;;  %v661_v36 = vld [vmem:[%s1090_s4] ss:$0 sm:$0xff] }
  0xae   :  { %v190_v54 = vmax.f32 %v182_v45, 0.0 }
  0xb0   :  { %v89_v38 = vpop.permute.xlu1 %88 }
  0xb1   :  { %v79_v39 = vpop.permute.xlu0 %78  ;;  %v118_v48 = vmul.f32 %v114_v31, %v89_v38 }
  0xb2   :  { %v116_v42 = vmul.f32 %v114_v31, %v79_v39 }
  0xb4   :  { %v168_v44 = vadd.f32 %v160_v41, %v116_v42 }
  0xb5   :  { %v137_v46 = vpop.permute.xlu1 %136  ;;  %v84_v47 = vpop.permute.xlu0 %83 }
  0xb6   :  { %v162_v49 = vmul.f32 %v158_v30, %v137_v46  ;;  %v117_v50 = vmul.f32 %v114_v31, %v84_v47  ;;  %v183_v51 = vadd.f32 %v660_v40, %v168_v44 }
  0xb8   :  { %v170_v52 = vadd.f32 %v162_v49, %v118_v48  ;;  %v169_v53 = vadd.f32 %v161_v43, %v117_v50  ;;  %v191_v55 = vmax.f32 %v183_v51, 0.0 }
  0xb9   :  { %v99_v56 = vpop.permute.xlu0 %98 }
  0xba   :  { %v185_v57 = vadd.f32 %v660_v40, %v170_v52  ;;  %v184_v58 = vadd.f32 %v660_v40, %v169_v53  ;;  %v94_v59 = vpop.permute.xlu1 %93  ;;  %v198_v60 = vpack.c.bf16 %v191_v55, %v190_v54  ;;  %v120_v6 = vmul.f32 %v114_v31, %v99_v56 }
  0xbb   :  { %v119_v2 = vmul.f32 %v114_v31, %v94_v59 }
  0xbc   :  { %v193_v61 = vmax.f32 %v185_v57, 0.0  ;;  %v192_v62 = vmax.f32 %v184_v58, 0.0  ;;  %740 = vmatprep.mubr.bf16.mxu0 %v198_v60 }
  0xbd   :  { %v104_v0 = vpop.permute.xlu0 %103 }
  0xbe   :  { %v199_v63 = vpack.c.bf16 %v193_v61, %v192_v62  ;;  %v121_v14 = vmul.f32 %v114_v31, %v104_v0 }
  0xbf   :  { %v141_v1 = vpop.permute.xlu1 %140 }
  0xc0   :  { %v163_v3 = vmul.f32 %v158_v30, %v141_v1  ;;  %741 = vmatmul.mubr.bf16.vlgmr.msra.gmra.mrb[0].mxu0 %v199_v63  ;;  %v854_v1 = vld [vmem:[#allocation5 + $0x30] sm:$0xff]  }
  0xc1   :  { %773 = vmatpush3.bf16.msra.mxu0 %v848_v32 }
  0xc2   :  { %v171_v4 = vadd.f32 %v163_v3, %v119_v2  ;;  %v149_v8 = vpop.permute.xlu0 %148  ;;  %774 = vmatprep.subr.bf16.mxu0 %v849_v33  ;;  %v855_v2 = vld [vmem:[#allocation5 + $0x38] sm:$0xff]  }
  0xc3   :  { %v145_v5 = vpop.permute.xlu1 %144  ;;  %v165_v11 = vmul.f32 %v158_v30, %v149_v8  ;;  %v670_v3 = vld [vmem:[%s1092_s6] ss:$0 sm:$0xff] }
  0xc4   :  { %v164_v7 = vmul.f32 %v158_v30, %v145_v5  ;;  %v186_v9 = vadd.f32 %v660_v40, %v171_v4 }
  0xc5   :  { %v173_v17 = vadd.f32 %v165_v11, %v121_v14  ;;  %775 = vmatpush3.bf16.msra.mxu0 %v849_v33 }
  0xc6   :  { %v172_v10 = vadd.f32 %v164_v7, %v120_v6  ;;  %v194_v15 = vmax.f32 %v186_v9, 0.0 }
  0xc7   :  { %v188_v22 = vadd.f32 %v660_v40, %v173_v17 }
  0xc8   :  { %v187_v12 = vadd.f32 %v660_v40, %v172_v10  ;;  %v109_v13 = vpop.permute.xlu1 %108 }
  0xc9   :  { %v122_v20 = vmul.f32 %v114_v31, %v109_v13  ;;  %v196_v25 = vmax.f32 %v188_v22, 0.0  ;;  %v851_v31 = vld [vmem:[#allocation5 + $0x18] sm:$0xff]  }
  0xca   :  { %v195_v16 = vmax.f32 %v187_v12, 0.0 }
  0xcc   :  { %v200_v18 = vpack.c.bf16 %v195_v16, %v194_v15 }
  0xcd   :  { %v153_v19 = vpop.permute.xlu1 %152 }
  0xce   :  { %v166_v21 = vmul.f32 %v158_v30, %v153_v19  ;;  %744 = vmatprep.mubr.bf16.mxu0 %v200_v18  ;;  %v850_v30 = vld [vmem:[#allocation5 + $0x10] sm:$0xff]  }
  0xcf   :  { %776 = vmatprep.subr.bf16.mxu0 %v850_v30 }
  0xd0   :  { %v174_v23 = vadd.f32 %v166_v21, %v122_v20  ;;  %777 = vmatpush3.bf16.msra.mxu0 %v850_v30 }
  0xd1   :  { %778 = vmatprep.subr.bf16.mxu0 %v851_v31 }
  0xd2   :  { %v189_v24 = vadd.f32 %v660_v40, %v174_v23 }
  0xd4   :  { %v197_v26 = vmax.f32 %v189_v24, 0.0  ;;  %779 = vmatpush3.bf16.msra.mxu0 %v851_v31 }
  0xd5   :  { %780 = vmatprep.subr.bf16.mxu0 %v852_v34 }
  0xd6   :  { %v201_v27 = vpack.c.bf16 %v197_v26, %v196_v25 }
  0xd8   :  { %745 = vmatmul.mubr.bf16.gmra.mrb[4].mxu0 %v201_v27 }
  0xd9   :  { %781 = vmatpush3.bf16.msra.mxu0 %v852_v34 }
  0xda   :  { %782 = vmatprep.subr.bf16.mxu0 %v853_v35 }
  0xdd   :  { %783 = vmatpush3.bf16.msra.mxu0 %v853_v35 }
  0xde   :  { %784 = vmatprep.subr.bf16.mxu0 %v854_v1 }
  0xe1   :  { %785 = vmatpush3.bf16.msra.mxu0 %v854_v1 }
  0xe2   :  { %786 = vmatprep.subr.bf16.mxu0 %v855_v2 }
  0xe5   :  { %787 = vmatpush3.bf16.msra.mxu0 %v855_v2 }
 0x193   :  { %v742_v37 = vpop.f32.mrb[0].mxu0 }
 0x194   :  { %v316_v38 = vadd.f32 %v742_v37, %v661_v36  ;;  %v307_v39 = vpop.f32.mrb[1].mxu0 }
 0x195   :  { %v308_v40 = vadd.f32 %v661_v36, %v307_v39  ;;  %v743_v41 = vpop.f32.mrb[2].mxu0 }
 0x196   :  { %v319_v42 = vadd.f32 %v743_v41, %v661_v36  ;;  %v310_v43 = vpop.f32.mrb[3].mxu0  ;;  %v340_v45 = vmax.f32 %v316_v38, 0.0 }
 0x197   :  { %v311_v44 = vadd.f32 %v661_v36, %v310_v43  ;;  %v338_v47 = vmax.f32 %v308_v40, 0.0 }
 0x198   :  { %v341_v46 = vmax.f32 %v319_v42, 0.0 }
 0x199   :  { %v339_v48 = vmax.f32 %v311_v44, 0.0 }
 0x19a   :  { %v347_v49 = vpack.c.bf16 %v341_v46, %v340_v45 }
 0x19b   :  { %v346_v50 = vpack.c.bf16 %v339_v48, %v338_v47 }
 0x19d   :  { %764 = vmatprep.mubr.bf16.mxu1 %v346_v50 }
 0x19e   :  { %765 = vmatmul.mubr.bf16.vlgmr.msra.gmra.mrb[0].mxu1 %v347_v49 }
 0x19f   :  { %804 = vmatpush3.bf16.msra.mxu1 %v848_v32 }
 0x1a0   :  { %797 = vmatprep.subr.bf16.mxu1 %v849_v33 }
 0x1a3   :  { %805 = vmatpush3.bf16.msra.mxu1 %v849_v33 }
 0x1a4   :  { %798 = vmatprep.subr.bf16.mxu1 %v850_v30 }
 0x1a7   :  { %806 = vmatpush3.bf16.msra.mxu1 %v850_v30  ;;  %v679_v30 = vld [vmem:[%s1094_s8] ss:$0 sm:$0xff]  ;;  %s900_s8 = scalar_lea.vmem %s648_s26, 1024 }
 0x1a8   :  { %799 = vmatprep.subr.bf16.mxu1 %v851_v31  ;;  %p901_p2 = scmp.ne.s32.totalorder %s648_s26, %s900_s8  ;;  %p906_p4 = scmp.lt.s32.totalorder %s900_s8, %s900_s8 }
 0x1aa   :  { %p907_p5 = por %p906_p4, %p905_p3 }
 0x1ab   :  { %v746_v51 = vpop.f32.mrb[4].mxu0  ;;  %807 = vmatpush3.bf16.msra.mxu1 %v851_v31 }
 0x1ac   :  { %v332_v52 = vadd.f32 %v746_v51, %v661_v36  ;;  %v323_v53 = vpop.f32.mrb[5].mxu0  ;;  %800 = vmatprep.subr.bf16.mxu1 %v852_v34  ;;  %p908_p6 = pnand %p907_p5, %p901_p2 }
 0x1ad   :  { %v324_v54 = vadd.f32 %v661_v36, %v323_v53  ;;  %v747_v55 = vpop.f32.mrb[6].mxu0 }
 0x1ae   :  { %v335_v56 = vadd.f32 %v747_v55, %v661_v36  ;;  %v326_v57 = vpop.f32.mrb[7].mxu0  ;;  %v344_v59 = vmax.f32 %v332_v52, 0.0 }
 0x1af   :  { %v327_v58 = vadd.f32 %v661_v36, %v326_v57  ;;  %808 = vmatpush3.bf16.msra.mxu1 %v852_v34  ;;  %v342_v61 = vmax.f32 %v324_v54, 0.0 }
 0x1b0   :  { %v345_v60 = vmax.f32 %v335_v56, 0.0  ;;  %801 = vmatprep.subr.bf16.mxu1 %v853_v35 }
 0x1b1   :  { %v343_v62 = vmax.f32 %v327_v58, 0.0 }
 0x1b2   :  { %v349_v63 = vpack.c.bf16 %v345_v60, %v344_v59 }
 0x1b3   :  { %v348_v0 = vpack.c.bf16 %v343_v62, %v342_v61  ;;  %809 = vmatpush3.bf16.msra.mxu1 %v853_v35 }
 0x1b4   :  { %802 = vmatprep.subr.bf16.mxu1 %v854_v1 }
 0x1b5   :  { %768 = vmatprep.mubr.bf16.mxu1 %v348_v0 }
 0x1b6   :  { %769 = vmatmul.mubr.bf16.gmra.mrb[4].mxu1 %v349_v63 }
 0x1b7   :  { %810 = vmatpush3.bf16.msra.mxu1 %v854_v1 }
 0x1b8   :  { %803 = vmatprep.subr.bf16.mxu1 %v855_v2 }
 0x1bb   :  { %811 = vmatpush3.bf16.msra.mxu1 %v855_v2 }
 0x271   :  { %v766_v4 = vpop.f32.mrb[0].mxu1 }
 0x272   :  { %v464_v5 = vadd.f32 %v766_v4, %v670_v3  ;;  %v455_v6 = vpop.f32.mrb[1].mxu1 }
 0x273   :  { %v456_v7 = vadd.f32 %v670_v3, %v455_v6  ;;  %v767_v8 = vpop.f32.mrb[2].mxu1 }
 0x274   :  { %v467_v9 = vadd.f32 %v767_v8, %v670_v3  ;;  %v458_v10 = vpop.f32.mrb[3].mxu1  ;;  %v488_v12 = vmax.f32 %v464_v5, 0.0 }
 0x275   :  { %v459_v11 = vadd.f32 %v670_v3, %v458_v10  ;;  %v486_v14 = vmax.f32 %v456_v7, 0.0 }
 0x276   :  { %v489_v13 = vmax.f32 %v467_v9, 0.0 }
 0x277   :  { %v487_v15 = vmax.f32 %v459_v11, 0.0 }
 0x278   :  { %v495_v16 = vpack.c.bf16 %v489_v13, %v488_v12 }
 0x279   :  { %v494_v17 = vpack.c.bf16 %v487_v15, %v486_v14 }
 0x27b   :  { %788 = vmatprep.mubr.bf16.mxu0 %v494_v17 }
 0x27c   :  { %789 = vmatmul.mubr.bf16.vlgmr.msra.gmra.mrb[8].mxu0 %v495_v16 }
 0x289   :  { %v770_v18 = vpop.f32.mrb[4].mxu1 }
 0x28a   :  { %v480_v19 = vadd.f32 %v770_v18, %v670_v3  ;;  %v471_v20 = vpop.f32.mrb[5].mxu1 }
 0x28b   :  { %v472_v21 = vadd.f32 %v670_v3, %v471_v20  ;;  %v771_v22 = vpop.f32.mrb[6].mxu1 }
 0x28c   :  { %v483_v23 = vadd.f32 %v771_v22, %v670_v3  ;;  %v474_v24 = vpop.f32.mrb[7].mxu1  ;;  %v492_v26 = vmax.f32 %v480_v19, 0.0 }
 0x28d   :  { %v475_v25 = vadd.f32 %v670_v3, %v474_v24  ;;  %v490_v28 = vmax.f32 %v472_v21, 0.0 }
 0x28e   :  { %v493_v27 = vmax.f32 %v483_v23, 0.0 }
 0x28f   :  { %v491_v29 = vmax.f32 %v475_v25, 0.0 }
 0x290   :  { %v497_v32 = vpack.c.bf16 %v493_v27, %v492_v26 }
 0x291   :  { %v496_v33 = vpack.c.bf16 %v491_v29, %v490_v28 }
 0x293   :  { %792 = vmatprep.mubr.bf16.mxu1 %v496_v33 }
 0x294   :  { %793 = vmatmul.mubr.bf16.vlgmr.msra.gmra.mrb[8].mxu1 %v497_v32 }
 0x34f   :  { %v790_v31 = vpop.f32.mrb[8].mxu0 }
 0x350   :  { %v612_v34 = vadd.f32 %v790_v31, %v679_v30  ;;  %v603_v35 = vpop.f32.mrb[9].mxu0 }
 0x351   :  { %v604_v36 = vadd.f32 %v679_v30, %v603_v35  ;;  %v791_v37 = vpop.f32.mrb[10].mxu0 }
 0x352   :  { %636 = vst [vmem:[#allocation7 + $0x10] sm:$0xff] %v612_v34  ;;  %v615_v38 = vadd.f32 %v791_v37, %v679_v30  ;;  %v606_v39 = vpop.f32.mrb[11].mxu0 }
 0x353   :  { %634 = vst [vmem:[#allocation7] sm:$0xff] %v604_v36  ;;  %v607_v40 = vadd.f32 %v679_v30, %v606_v39 }
 0x354   :  { %637 = vst [vmem:[#allocation7 + $0x18] sm:$0xff] %v615_v38 }
 0x355   :  { %635 = vst [vmem:[#allocation7 + $0x8] sm:$0xff] %v607_v40 }
 0x367   :  { %v794_v41 = vpop.f32.mrb[8].mxu1 }
 0x368   :  { %v628_v42 = vadd.f32 %v794_v41, %v679_v30  ;;  %v619_v43 = vpop.f32.mrb[9].mxu1 }
 0x369   :  { %v620_v44 = vadd.f32 %v679_v30, %v619_v43  ;;  %v795_v45 = vpop.f32.mrb[10].mxu1 }
 0x36a   :  { %640 = vst [vmem:[#allocation7 + $0x30] sm:$0xff] %v628_v42  ;;  %v631_v46 = vadd.f32 %v795_v45, %v679_v30  ;;  %v622_v47 = vpop.f32.mrb[11].mxu1 }
 0x36b   :  { %638 = vst [vmem:[#allocation7 + $0x20] sm:$0xff] %v620_v44  ;;  %v623_v48 = vadd.f32 %v679_v30, %v622_v47 }
 0x36c   :  { %641 = vst [vmem:[#allocation7 + $0x38] sm:$0xff] %v631_v46 }
 0x36d   :  { %639 = vst [vmem:[#allocation7 + $0x28] sm:$0xff] %v623_v48 }
 0x36e   :  { %911 = shalt.err (!%p908_p6)
}
 0x36f   :  { %s912_s29 = scalar_lea.hbm %s1095_s9, 1024 }
 0x370   :  { %p913_p7 = scmp.ne.s32.totalorder %s1095_s9, %s912_s29  ;;  %p916_p8 = scmp.lt.u32.totalorder %s912_s29, %s1095_s9 }
 0x372   :  { %p918_p9 = pnand %p916_p8, %p913_p7 }
 0x374   :  { %921 = shalt.err (!%p918_p9)
}
 0x375   :  { %s935_s10 = smov 128   ;;  %s936_s13 = smov 8  }
 0x376   :  { %653 = dma.vmem_to_hbm [thread:$0]  %s648_s26, 1024, %s1095_s9, [#allocation4], %s935_s10, %s935_s10, %s936_s13  }
 0x377   :  { %926 = dma.done.wait [#allocation4], 1024  }
 0x378   :  { %927 = vsyncadd [#allocation4], 4294966272 }
 0x379   :  { %657 = vsyncpa [#allocation3], 1 }
 0x37a   :  { %658 = vsyncpa [#allocation6], 1 }
 0x37b   :  { %659 = vsyncpa [#allocation4], 1 }

</bundles_post_ra>
